<compile_context>
chip_gen: v5e
topology: v5e:2x2
jax: 0.10.0
libtpu: 0.0.40
codegen_flags: <defaults>
</compile_context>

<pallas_src>
import jax
import jax.numpy as jnp
from jax.experimental import pallas as pl
from jax.experimental.pallas import tpu as pltpu

LANE = 128      # lane width (last dim)
SUBLANE = 8     # sublane width (second-to-last dim)

LAYERS = ("e1", "e2", "z", "d1", "d2", "x")


def _round_up(x, m):
    return (x + m - 1) // m * m


def _cdiv(a, b):
    return -(-a // b)


# -----------------------------------------------------------------------------
# Kernel
# -----------------------------------------------------------------------------
def dae_kernel(x_ref,
               w_e1, b_e1, w_e2, b_e2, w_z, b_z,
               w_d1, b_d1, w_d2, b_d2, w_x, b_x,
               xbar_ref, z_ref):
    """One batch tile of the fused encoder -> z -> decoder chain."""

    def dense(act_bf16, w_ref, b_ref):
        # bf16 x bf16 -> f32 accumulation on the MXU; bias add in f32 on VPU.
        return jnp.dot(act_bf16, w_ref[...],
                       preferred_element_type=jnp.float32) + b_ref[...]

    x = x_ref[...].astype(jnp.bfloat16)          # f32 in VMEM, cast once here

    # encoder
    h1 = jnp.maximum(dense(x, w_e1, b_e1), 0.0).astype(jnp.bfloat16)
    h2 = jnp.maximum(dense(h1, w_e2, b_e2), 0.0).astype(jnp.bfloat16)

    # latent (no activation) -- store immediately to end its live range early
    z_f32 = dense(h2, w_z, b_z)
    z_ref[...] = z_f32.astype(z_ref.dtype)
    z_bf = z_f32.astype(jnp.bfloat16)

    # decoder
    d1 = jnp.maximum(dense(z_bf, w_d1, b_d1), 0.0).astype(jnp.bfloat16)
    d2 = jnp.maximum(dense(d1, w_d2, b_d2), 0.0).astype(jnp.bfloat16)

    # reconstruction (no activation)
    xbar_ref[...] = dense(d2, w_x, b_x).astype(xbar_ref.dtype)


# -----------------------------------------------------------------------------
# Parameter preparation (hoisted out of the per-call path)
# -----------------------------------------------------------------------------
def prepare_params(params):
    """Pad feature dims / cast weights to bf16 ONCE (call at init, reuse).

    Layout rules:
      * first layer's input dim stays at the true n_input (x is read unpadded),
      * every output dim is zero-padded to a multiple of 128 lanes,
      * every subsequent input dim is padded to match the previous (padded)
        activation width.
    Zero padding propagates exactly: padded bias/weight columns are zero, so
    padded activation columns stay zero through bias-add/ReLU.
    """
    n_input = params["w_e1"].shape[0]
    n_z = params["w_z"].shape[1]

    flat = []
    prev_width = n_input                      # width of the incoming activation
    for name in LAYERS:
        w = params[f"w_{name}"]
        b = params[f"b_{name}"].reshape(1, -1)
        fi, fo = w.shape
        fo_p = _round_up(fo, LANE)
        w_p = jnp.pad(w, ((0, prev_width - fi), (0, fo_p - fo))).astype(jnp.bfloat16)
        b_p = jnp.pad(b, ((0, 0), (0, fo_p - fo))).astype(jnp.float32)
        flat += [w_p, b_p]
        prev_width = fo_p

    return {"flat": tuple(flat), "n_input": n_input, "n_z": n_z}


# -----------------------------------------------------------------------------
# Forward wrapper
# -----------------------------------------------------------------------------
def dae_forward(x, prepared, *, batch_tile=512, return_padded=False):
    """x: [B, n_input] float32. prepared: output of prepare_params().

    Returns (x_bar [B, n_input] bf16, z [B, n_z] bf16); if return_padded=True,
    returns the lane-padded [B_pad, 128] arrays (avoids the post-kernel slice
    copy when the consumer can handle padding).
    """
    flat = prepared["flat"]
    n_input, n_z = prepared["n_input"], prepared["n_z"]
    B, n_in_actual = x.shape
    assert n_in_actual == n_input

    n_in_p = _round_up(n_input, LANE)
    n_z_p = _round_up(n_z, LANE)

    # --- batch tiling: minimize pad waste, keep grid >= 2 for v7x megacore ----
    num_tiles = max(1, _cdiv(B, batch_tile))
    if num_tiles < 2 and B > SUBLANE:
        num_tiles = 2
    bt = _round_up(_cdiv(B, num_tiles), SUBLANE)
    B_pad = bt * num_tiles
    x_p = x if B_pad == B else jnp.pad(x, ((0, B_pad - B), (0, 0)))  # f32, no cast

    grid = (num_tiles,)

    # x block keeps the true feature width (legal: equals the full array dim);
    # cast to bf16 happens inside the kernel (reads f32 once from HBM).
    in_specs = [pl.BlockSpec((bt, n_input), lambda i: (i, 0))]
    # Weights/biases: full-array blocks, constant index_map (resident in VMEM).
    in_specs += [pl.BlockSpec(a.shape, lambda i: (0, 0)) for a in flat]

    out_specs = [
        pl.BlockSpec((bt, n_in_p), lambda i: (i, 0)),  # x_bar (lane-dense)
        pl.BlockSpec((bt, n_z_p), lambda i: (i, 0)),   # z     (lane-dense)
    ]
    out_shape = (
        jax.ShapeDtypeStruct((B_pad, n_in_p), jnp.bfloat16),
        jax.ShapeDtypeStruct((B_pad, n_z_p), jnp.bfloat16),
    )

    # --- advisory cost estimate (padded problem) -------------------------------
    weight_elems = sum(int(flat[2 * i].size) for i in range(len(LAYERS)))
    flops = 2 * B_pad * weight_elems
    bytes_accessed = (
        int(x_p.size) * 4                                        # f32 input
        + sum(int(a.size) * a.dtype.itemsize for a in flat)      # params
        + B_pad * (n_in_p + n_z_p) * 2                           # bf16 outputs
    )
    cost = pl.CostEstimate(flops=int(flops), transcendentals=0,
                           bytes_accessed=int(bytes_accessed))

    fn = pl.pallas_call(
        dae_kernel,
        out_shape=out_shape,
        grid_spec=pltpu.PrefetchScalarGridSpec(
            num_scalar_prefetch=0,
            grid=grid,
            in_specs=in_specs,
            out_specs=out_specs,
        ),
        compiler_params=pltpu.CompilerParams(
            dimension_semantics=("parallel",),   # shards batch tiles across TCs on v7x
            vmem_limit_bytes=32 * 1024 * 1024,   # explicit budget (safe on v5e/v6e/v7x)
        ),
        cost_estimate=cost,
    )
    xbar_p, z_p = fn(x_p, *flat)

    if return_padded:
        return xbar_p, z_p
    return xbar_p[:B, :n_input], z_p[:B, :n_z]


# -----------------------------------------------------------------------------
# Init + reference
# -----------------------------------------------------------------------------
def init_params(key, n_enc_1, n_enc_2, n_dec_1, n_dec_2, n_input, n_z):
    """Deterministic init. Weights stored as [in, out]; biases as [1, out]."""
    dims = [
        ("e1", n_input, n_enc_1),
        ("e2", n_enc_1, n_enc_2),
        ("z",  n_enc_2, n_z),
        ("d1", n_z,     n_dec_1),
        ("d2", n_dec_1, n_dec_2),
        ("x",  n_dec_2, n_input),
    ]
    params = {}
    for name, fan_in, fan_out in dims:
        key, kw, kb = jax.random.split(key, 3)
        bound = 1.0 / (fan_in ** 0.5)  # PyTorch Linear default init range
        params[f"w_{name}"] = jax.random.uniform(
            kw, (fan_in, fan_out), jnp.float32, -bound, bound)
        params[f"b_{name}"] = jax.random.uniform(
            kb, (1, fan_out), jnp.float32, -bound, bound)
    return params


def dae_reference(x, params, matmul_dtype=jnp.float32):
    """Plain-JAX reference. matmul_dtype=bf16 emulates the kernel's MXU numerics."""
    def dense(a, w, b):
        return jnp.dot(a.astype(matmul_dtype), w.astype(matmul_dtype),
                       preferred_element_type=jnp.float32) + b
    relu = lambda v: jnp.maximum(v, 0.0)
    h1 = relu(dense(x, params["w_e1"], params["b_e1"]))
    h2 = relu(dense(h1, params["w_e2"], params["b_e2"]))
    z = dense(h2, params["w_z"], params["b_z"])
    d1 = relu(dense(z, params["w_d1"], params["b_d1"]))
    d2 = relu(dense(d1, params["w_d2"], params["b_d2"]))
    x_bar = dense(d2, params["w_x"], params["b_x"])
    return x_bar, z


if __name__ == "__main__":
    # Small shapes consistent with the module's forward.
    n_input, n_enc_1, n_enc_2, n_z = 64, 128, 64, 32
    n_dec_1, n_dec_2 = 64, 128
    batch = 300  # not a tile multiple: exercises the low-waste batch tiling path

    key = jax.random.PRNGKey(0)
    key, kx = jax.random.split(key)
    x = jax.random.normal(kx, (batch, n_input), jnp.float32)

    params = init_params(key, n_enc_1, n_enc_2, n_dec_1, n_dec_2, n_input, n_z)
    prepared = prepare_params(params)          # pad/cast once, outside the call path

    x_bar, z = dae_forward(x, prepared, batch_tile=512)
    jax.block_until_ready((x_bar, z))

    assert x_bar.shape == (batch, n_input) and z.shape == (batch, n_z)

    x_bar_f = x_bar.astype(jnp.float32)
    z_f = z.astype(jnp.float32)

    # Primary check: against a reference using the same bf16-matmul numerics
    # (tolerance covers the final bf16 output rounding of the kernel).
    x_bar_bf, z_bf = dae_reference(x, params, matmul_dtype=jnp.bfloat16)
    assert jnp.allclose(x_bar_f, x_bar_bf, atol=2e-2, rtol=2e-2), "x_bar mismatch (bf16 ref)"
    assert jnp.allclose(z_f, z_bf, atol=2e-2, rtol=2e-2), "z mismatch (bf16 ref)"

    # Sanity check: normalized max error vs the full-f32 reference stays small.
    x_bar_f32, z_f32 = dae_reference(x, params, matmul_dtype=jnp.float32)
    err_x = jnp.max(jnp.abs(x_bar_f - x_bar_f32)) / (jnp.max(jnp.abs(x_bar_f32)) + 1e-6)
    err_z = jnp.max(jnp.abs(z_f - z_f32)) / (jnp.max(jnp.abs(z_f32)) + 1e-6)
    assert err_x < 5e-2 and err_z < 5e-2, (err_x, err_z)

    # TODO(synk): add_noise() (torch.randn noise injection) is train-time only and
    # not part of forward(); it is intentionally not implemented here.

    print("KERNEL_OK")
</pallas_src>

<mosaic_0001>
module attributes {stable_mosaic.version = 11 : i64} {
  func.func @dae_kernel(%arg0: i32, %arg1: memref<152x64xf32, #tpu.memory_space<vmem>>, %arg2: memref<64x128xbf16, #tpu.memory_space<vmem>>, %arg3: memref<1x128xf32, #tpu.memory_space<vmem>>, %arg4: memref<128x128xbf16, #tpu.memory_space<vmem>>, %arg5: memref<1x128xf32, #tpu.memory_space<vmem>>, %arg6: memref<128x128xbf16, #tpu.memory_space<vmem>>, %arg7: memref<1x128xf32, #tpu.memory_space<vmem>>, %arg8: memref<128x128xbf16, #tpu.memory_space<vmem>>, %arg9: memref<1x128xf32, #tpu.memory_space<vmem>>, %arg10: memref<128x128xbf16, #tpu.memory_space<vmem>>, %arg11: memref<1x128xf32, #tpu.memory_space<vmem>>, %arg12: memref<128x128xbf16, #tpu.memory_space<vmem>>, %arg13: memref<1x128xf32, #tpu.memory_space<vmem>>, %arg14: memref<152x128xbf16, #tpu.memory_space<vmem>>, %arg15: memref<152x128xbf16, #tpu.memory_space<vmem>>) attributes {dimension_semantics = [#tpu.dimension_semantics<parallel>], iteration_bounds = array<i64: 2>, scalar_prefetch = 0 : i64, scratch_operands = 0 : i64, tpu.core_type = #tpu.core_type<tc>, window_params = [{transform_indices = @transform_0, window_bounds = array<i64: 152, 64>}, {pipeline_mode = #tpu.pipeline_mode<synchronous>, transform_indices = @transform_1, window_bounds = array<i64: 64, 128>}, {pipeline_mode = #tpu.pipeline_mode<synchronous>, transform_indices = @transform_2, window_bounds = array<i64: 1, 128>}, {pipeline_mode = #tpu.pipeline_mode<synchronous>, transform_indices = @transform_3, window_bounds = array<i64: 128, 128>}, {pipeline_mode = #tpu.pipeline_mode<synchronous>, transform_indices = @transform_4, window_bounds = array<i64: 1, 128>}, {pipeline_mode = #tpu.pipeline_mode<synchronous>, transform_indices = @transform_5, window_bounds = array<i64: 128, 128>}, {pipeline_mode = #tpu.pipeline_mode<synchronous>, transform_indices = @transform_6, window_bounds = array<i64: 1, 128>}, {pipeline_mode = #tpu.pipeline_mode<synchronous>, transform_indices = @transform_7, window_bounds = array<i64: 128, 128>}, {pipeline_mode = #tpu.pipeline_mode<synchronous>, transform_indices = @transform_8, window_bounds = array<i64: 1, 128>}, {pipeline_mode = #tpu.pipeline_mode<synchronous>, transform_indices = @transform_9, window_bounds = array<i64: 128, 128>}, {pipeline_mode = #tpu.pipeline_mode<synchronous>, transform_indices = @transform_10, window_bounds = array<i64: 1, 128>}, {pipeline_mode = #tpu.pipeline_mode<synchronous>, transform_indices = @transform_11, window_bounds = array<i64: 128, 128>}, {pipeline_mode = #tpu.pipeline_mode<synchronous>, transform_indices = @transform_12, window_bounds = array<i64: 1, 128>}, {transform_indices = @transform_13, window_bounds = array<i64: 152, 128>}, {transform_indices = @transform_14, window_bounds = array<i64: 152, 128>}]} {
    %c0 = arith.constant 0 : index
    %c0_0 = arith.constant 0 : index
    %0 = vector.load %arg1[%c0, %c0_0] : memref<152x64xf32, #tpu.memory_space<vmem>>, vector<152x64xf32>
    %1 = arith.truncf %0 : vector<152x64xf32> to vector<152x64xbf16>
    %c0_1 = arith.constant 0 : index
    %c0_2 = arith.constant 0 : index
    %2 = vector.load %arg2[%c0_1, %c0_2] : memref<64x128xbf16, #tpu.memory_space<vmem>>, vector<64x128xbf16>
    %cst = arith.constant dense<0.000000e+00> : vector<152x128xf32>
    %3 = tpu.matmul %1, %2, %cst {dimension_numbers = #tpu.dot_dimension_numbers<[1], [0], [0], [1], [0, 0, 1, 1], [], []>} : vector<152x64xbf16>, vector<64x128xbf16>, vector<152x128xf32> -> vector<152x128xf32>
    %c0_3 = arith.constant 0 : index
    %c0_4 = arith.constant 0 : index
    %4 = vector.load %arg3[%c0_3, %c0_4] : memref<1x128xf32, #tpu.memory_space<vmem>>, vector<1x128xf32>
    %5 = vector.broadcast %4 : vector<1x128xf32> to vector<152x128xf32>
    %6 = arith.addf %3, %5 : vector<152x128xf32>
    %cst_5 = arith.constant 0.000000e+00 : f32
    %7 = vector.broadcast %cst_5 : f32 to vector<152x128xf32>
    %8 = arith.maximumf %6, %7 : vector<152x128xf32>
    %9 = arith.truncf %8 : vector<152x128xf32> to vector<152x128xbf16>
    %c0_6 = arith.constant 0 : index
    %c0_7 = arith.constant 0 : index
    %10 = vector.load %arg4[%c0_6, %c0_7] : memref<128x128xbf16, #tpu.memory_space<vmem>>, vector<128x128xbf16>
    %cst_8 = arith.constant dense<0.000000e+00> : vector<152x128xf32>
    %11 = tpu.matmul %9, %10, %cst_8 {dimension_numbers = #tpu.dot_dimension_numbers<[1], [0], [0], [1], [0, 0, 1, 1], [], []>} : vector<152x128xbf16>, vector<128x128xbf16>, vector<152x128xf32> -> vector<152x128xf32>
    %c0_9 = arith.constant 0 : index
    %c0_10 = arith.constant 0 : index
    %12 = vector.load %arg5[%c0_9, %c0_10] : memref<1x128xf32, #tpu.memory_space<vmem>>, vector<1x128xf32>
    %13 = vector.broadcast %12 : vector<1x128xf32> to vector<152x128xf32>
    %14 = arith.addf %11, %13 : vector<152x128xf32>
    %cst_11 = arith.constant 0.000000e+00 : f32
    %15 = vector.broadcast %cst_11 : f32 to vector<152x128xf32>
    %16 = arith.maximumf %14, %15 : vector<152x128xf32>
    %17 = arith.truncf %16 : vector<152x128xf32> to vector<152x128xbf16>
    %c0_12 = arith.constant 0 : index
    %c0_13 = arith.constant 0 : index
    %18 = vector.load %arg6[%c0_12, %c0_13] : memref<128x128xbf16, #tpu.memory_space<vmem>>, vector<128x128xbf16>
    %cst_14 = arith.constant dense<0.000000e+00> : vector<152x128xf32>
    %19 = tpu.matmul %17, %18, %cst_14 {dimension_numbers = #tpu.dot_dimension_numbers<[1], [0], [0], [1], [0, 0, 1, 1], [], []>} : vector<152x128xbf16>, vector<128x128xbf16>, vector<152x128xf32> -> vector<152x128xf32>
    %c0_15 = arith.constant 0 : index
    %c0_16 = arith.constant 0 : index
    %20 = vector.load %arg7[%c0_15, %c0_16] : memref<1x128xf32, #tpu.memory_space<vmem>>, vector<1x128xf32>
    %21 = vector.broadcast %20 : vector<1x128xf32> to vector<152x128xf32>
    %22 = arith.addf %19, %21 : vector<152x128xf32>
    %23 = arith.truncf %22 : vector<152x128xf32> to vector<152x128xbf16>
    %c0_17 = arith.constant 0 : index
    %c0_18 = arith.constant 0 : index
    %24 = vector.load %arg15[%c0_17, %c0_18] : memref<152x128xbf16, #tpu.memory_space<vmem>>, vector<152x128xbf16>
    tpu.vector_store %arg15[%c0_17, %c0_18], %23 {strides = array<i32>} : memref<152x128xbf16, #tpu.memory_space<vmem>>, vector<152x128xbf16>,
    %25 = arith.truncf %22 : vector<152x128xf32> to vector<152x128xbf16>
    %c0_19 = arith.constant 0 : index
    %c0_20 = arith.constant 0 : index
    %26 = vector.load %arg8[%c0_19, %c0_20] : memref<128x128xbf16, #tpu.memory_space<vmem>>, vector<128x128xbf16>
    %cst_21 = arith.constant dense<0.000000e+00> : vector<152x128xf32>
    %27 = tpu.matmul %25, %26, %cst_21 {dimension_numbers = #tpu.dot_dimension_numbers<[1], [0], [0], [1], [0, 0, 1, 1], [], []>} : vector<152x128xbf16>, vector<128x128xbf16>, vector<152x128xf32> -> vector<152x128xf32>
    %c0_22 = arith.constant 0 : index
    %c0_23 = arith.constant 0 : index
    %28 = vector.load %arg9[%c0_22, %c0_23] : memref<1x128xf32, #tpu.memory_space<vmem>>, vector<1x128xf32>
    %29 = vector.broadcast %28 : vector<1x128xf32> to vector<152x128xf32>
    %30 = arith.addf %27, %29 : vector<152x128xf32>
    %cst_24 = arith.constant 0.000000e+00 : f32
    %31 = vector.broadcast %cst_24 : f32 to vector<152x128xf32>
    %32 = arith.maximumf %30, %31 : vector<152x128xf32>
    %33 = arith.truncf %32 : vector<152x128xf32> to vector<152x128xbf16>
    %c0_25 = arith.constant 0 : index
    %c0_26 = arith.constant 0 : index
    %34 = vector.load %arg10[%c0_25, %c0_26] : memref<128x128xbf16, #tpu.memory_space<vmem>>, vector<128x128xbf16>
    %cst_27 = arith.constant dense<0.000000e+00> : vector<152x128xf32>
    %35 = tpu.matmul %33, %34, %cst_27 {dimension_numbers = #tpu.dot_dimension_numbers<[1], [0], [0], [1], [0, 0, 1, 1], [], []>} : vector<152x128xbf16>, vector<128x128xbf16>, vector<152x128xf32> -> vector<152x128xf32>
    %c0_28 = arith.constant 0 : index
    %c0_29 = arith.constant 0 : index
    %36 = vector.load %arg11[%c0_28, %c0_29] : memref<1x128xf32, #tpu.memory_space<vmem>>, vector<1x128xf32>
    %37 = vector.broadcast %36 : vector<1x128xf32> to vector<152x128xf32>
    %38 = arith.addf %35, %37 : vector<152x128xf32>
    %cst_30 = arith.constant 0.000000e+00 : f32
    %39 = vector.broadcast %cst_30 : f32 to vector<152x128xf32>
    %40 = arith.maximumf %38, %39 : vector<152x128xf32>
    %41 = arith.truncf %40 : vector<152x128xf32> to vector<152x128xbf16>
    %c0_31 = arith.constant 0 : index
    %c0_32 = arith.constant 0 : index
    %42 = vector.load %arg12[%c0_31, %c0_32] : memref<128x128xbf16, #tpu.memory_space<vmem>>, vector<128x128xbf16>
    %cst_33 = arith.constant dense<0.000000e+00> : vector<152x128xf32>
    %43 = tpu.matmul %41, %42, %cst_33 {dimension_numbers = #tpu.dot_dimension_numbers<[1], [0], [0], [1], [0, 0, 1, 1], [], []>} : vector<152x128xbf16>, vector<128x128xbf16>, vector<152x128xf32> -> vector<152x128xf32>
    %c0_34 = arith.constant 0 : index
    %c0_35 = arith.constant 0 : index
    %44 = vector.load %arg13[%c0_34, %c0_35] : memref<1x128xf32, #tpu.memory_space<vmem>>, vector<1x128xf32>
    %45 = vector.broadcast %44 : vector<1x128xf32> to vector<152x128xf32>
    %46 = arith.addf %43, %45 : vector<152x128xf32>
    %47 = arith.truncf %46 : vector<152x128xf32> to vector<152x128xbf16>
    %c0_36 = arith.constant 0 : index
    %c0_37 = arith.constant 0 : index
    %48 = vector.load %arg14[%c0_36, %c0_37] : memref<152x128xbf16, #tpu.memory_space<vmem>>, vector<152x128xbf16>
    tpu.vector_store %arg14[%c0_36, %c0_37], %47 {strides = array<i32>} : memref<152x128xbf16, #tpu.memory_space<vmem>>, vector<152x128xbf16>,
    return
  }
  func.func @transform_0(%arg0: i32) -> (i32, i32) {
    %c0_i32 = arith.constant 0 : i32
    %c0_i32_0 = arith.constant 0 : i32
    return %arg0, %c0_i32 : i32, i32
  }
  func.func @transform_1(%arg0: i32) -> (i32, i32) {
    %c0_i32 = arith.constant 0 : i32
    %c0_i32_0 = arith.constant 0 : i32
    %c0_i32_1 = arith.constant 0 : i32
    return %c0_i32, %c0_i32_0 : i32, i32
  }
  func.func @transform_2(%arg0: i32) -> (i32, i32) {
    %c0_i32 = arith.constant 0 : i32
    %c0_i32_0 = arith.constant 0 : i32
    %c0_i32_1 = arith.constant 0 : i32
    return %c0_i32, %c0_i32_0 : i32, i32
  }
  func.func @transform_3(%arg0: i32) -> (i32, i32) {
    %c0_i32 = arith.constant 0 : i32
    %c0_i32_0 = arith.constant 0 : i32
    %c0_i32_1 = arith.constant 0 : i32
    return %c0_i32, %c0_i32_0 : i32, i32
  }
  func.func @transform_4(%arg0: i32) -> (i32, i32) {
    %c0_i32 = arith.constant 0 : i32
    %c0_i32_0 = arith.constant 0 : i32
    %c0_i32_1 = arith.constant 0 : i32
    return %c0_i32, %c0_i32_0 : i32, i32
  }
  func.func @transform_5(%arg0: i32) -> (i32, i32) {
    %c0_i32 = arith.constant 0 : i32
    %c0_i32_0 = arith.constant 0 : i32
    %c0_i32_1 = arith.constant 0 : i32
    return %c0_i32, %c0_i32_0 : i32, i32
  }
  func.func @transform_6(%arg0: i32) -> (i32, i32) {
    %c0_i32 = arith.constant 0 : i32
    %c0_i32_0 = arith.constant 0 : i32
    %c0_i32_1 = arith.constant 0 : i32
    return %c0_i32, %c0_i32_0 : i32, i32
  }
  func.func @transform_7(%arg0: i32) -> (i32, i32) {
    %c0_i32 = arith.constant 0 : i32
    %c0_i32_0 = arith.constant 0 : i32
    %c0_i32_1 = arith.constant 0 : i32
    return %c0_i32, %c0_i32_0 : i32, i32
  }
  func.func @transform_8(%arg0: i32) -> (i32, i32) {
    %c0_i32 = arith.constant 0 : i32
    %c0_i32_0 = arith.constant 0 : i32
    %c0_i32_1 = arith.constant 0 : i32
    return %c0_i32, %c0_i32_0 : i32, i32
  }
  func.func @transform_9(%arg0: i32) -> (i32, i32) {
    %c0_i32 = arith.constant 0 : i32
    %c0_i32_0 = arith.constant 0 : i32
    %c0_i32_1 = arith.constant 0 : i32
    return %c0_i32, %c0_i32_0 : i32, i32
  }
  func.func @transform_10(%arg0: i32) -> (i32, i32) {
    %c0_i32 = arith.constant 0 : i32
    %c0_i32_0 = arith.constant 0 : i32
    %c0_i32_1 = arith.constant 0 : i32
    return %c0_i32, %c0_i32_0 : i32, i32
  }
  func.func @transform_11(%arg0: i32) -> (i32, i32) {
    %c0_i32 = arith.constant 0 : i32
    %c0_i32_0 = arith.constant 0 : i32
    %c0_i32_1 = arith.constant 0 : i32
    return %c0_i32, %c0_i32_0 : i32, i32
  }
  func.func @transform_12(%arg0: i32) -> (i32, i32) {
    %c0_i32 = arith.constant 0 : i32
    %c0_i32_0 = arith.constant 0 : i32
    %c0_i32_1 = arith.constant 0 : i32
    return %c0_i32, %c0_i32_0 : i32, i32
  }
  func.func @transform_13(%arg0: i32) -> (i32, i32) {
    %c0_i32 = arith.constant 0 : i32
    %c0_i32_0 = arith.constant 0 : i32
    return %arg0, %c0_i32 : i32, i32
  }
  func.func @transform_14(%arg0: i32) -> (i32, i32) {
    %c0_i32 = arith.constant 0 : i32
    %c0_i32_0 = arith.constant 0 : i32
    return %arg0, %c0_i32 : i32, i32
  }
}

</mosaic_0001>

<bundles_post_ra>
// kernel: tpu_custom_call.1
= control target key start
LH: loop header
LB: loop body
LE: loop exit
PB: predicated region body
PF: predicated region fallthrough
CT: control target
= control target key end

     0   :  { %s2683_s0 = inlined_call_operand.vmem [shape: f32[304,64], index: 0, kind: input, shape index: {}]   ;;  %s2684_s1 = inlined_call_operand.vmem [shape: bf16[64,128], index: 1, kind: input, shape index: {}]   ;;  %s2685_s2 = inlined_call_operand.vmem [shape: f32[1,128], index: 2, kind: input, shape index: {}]   ;;  %s2686_s3 = inlined_call_operand.vmem [shape: bf16[128,128], index: 3, kind: input, shape index: {}]   ;;  %s2687_s4 = inlined_call_operand.vmem [shape: f32[1,128], index: 4, kind: input, shape index: {}]   ;;  %s2688_s5 = inlined_call_operand.vmem [shape: bf16[128,128], index: 5, kind: input, shape index: {}]   ;;  %s2689_s6 = inlined_call_operand.vmem [shape: f32[1,128], index: 6, kind: input, shape index: {}]   ;;  %s2690_s7 = inlined_call_operand.vmem [shape: bf16[128,128], index: 7, kind: input, shape index: {}]   ;;  %s2691_s8 = inlined_call_operand.vmem [shape: f32[1,128], index: 8, kind: input, shape index: {}]   ;;  %s2692_s9 = inlined_call_operand.vmem [shape: bf16[128,128], index: 9, kind: input, shape index: {}]   ;;  %s2693_s10 = inlined_call_operand.vmem [shape: f32[1,128], index: 10, kind: input, shape index: {}]   ;;  %s2694_s11 = inlined_call_operand.vmem [shape: bf16[128,128], index: 11, kind: input, shape index: {}]   ;;  %s2695_s12 = inlined_call_operand.vmem [shape: f32[1,128], index: 12, kind: input, shape index: {}]   ;;  %s2696_s13 = inlined_call_operand.hbm [shape: bf16[304,128], index: 13, kind: output, shape index: {0}]   ;;  %s2697_s14 = inlined_call_operand.hbm [shape: bf16[304,128], index: 14, kind: output, shape index: {1}]  }
   0x1   :  { %2700 = sst [smem:[#allocation10_spill]] %s2683_s0 }
   0x2   :  { %2701 = sst [smem:[#allocation11_spill]] %s2684_s1 }
   0x3   :  { %2702 = sst [smem:[#allocation12_spill]] %s2685_s2 }
   0x4   :  { %2703 = sst [smem:[#allocation13_spill]] %s2686_s3 }
   0x5   :  { %2704 = sst [smem:[#allocation14_spill]] %s2687_s4 }
   0x6   :  { %20 = vsyncpa [#allocation3], 0 }
   0x7   :  { %22 = vsyncpa [#allocation3 + $0x1], 0 }
   0x8   :  { %23 = vsyncpa [#allocation5], 0 }
   0x9   :  { %25 = vsyncpa [#allocation5 + $0x1], 0  ;;  %s2234_s29 = smov 0   ;;  %s2236_s30 = smov 0  }
   0xa   :  { %s2238_s15 = smov 0   ;;  %s2240_s16 = smov 0  }
   0xb LB: > { %2705 = sst [smem:[#allocation8_spill]] %s2151_s15  ;;  %s2255_s17 = sadd.s32 4294967295, %s2155_s16   ;;  %s2155_s16 = sphi %s2240_s16, %s2719_s16   ;;  %s2151_s15 = sphi %s2238_s15, %s2716_s15   ;;  %s2147_s30 = sphi %s2236_s30, %s2718_s30   ;;  %s2143_s29 = sphi %s2234_s29, %s2717_s29  }
   0xc   : > { %s1649_s18 = sadd.s32 4294967294, %s2155_s16   ;;  %s2259_s19 = sadd.s32 1, %s2155_s16  }
   0xd   : > { %s316_s20 = sadd.s32 1, %s2151_s15  ;;  %s313_s21 = ssub.s32 %s2155_s16, %s2259_s19 }
   0xe   : > { %p326_p0 = scmp.ne.s32.totalorder %s2151_s15, %s2147_s30  ;;  %p314_p1 = scmp.eq.s32.totalorder %s313_s21, 0 }
   0xf   : > { %p327_p2 = scmp.eq.s32.totalorder %s2255_s17, 1  ;;  %p332_p3 = scmp.ne.s32.totalorder %s2147_s30, %s2143_s29 }
  0x10   : > { %p333_p4 = scmp.eq.s32.totalorder %s1649_s18, 1  ;;  %p1652_p7 = scmp.ge.s32.totalorder %s2155_s16, 1 }
  0x11   : > { %s2270_s22 = scalar_select %p314_p1, %s2151_s15, %s316_s20  }
  0x12   : > { %p2272_p5 = por %p327_p2, %p326_p0  ;;  %p2276_p6 = por %p333_p4, %p332_p3 }
  0x13   : > { %2706 = sst [smem:[#allocation9_spill]] %s2270_s22  ;;  %p422_p8 = scmp.lt.s32.totalorder %s2155_s16, 3 }
  0x15   : > { %p423_p9 = pnand %p1652_p7, %p422_p8 }
  0x16   : > { %s2709_s1 = sld [smem:[#allocation11_spill]] (!%p423_p9)  ;;  %s473_s27 = smul.u32 (!%p423_p9), 19, %s2255_s17 }
  0x17   : > { %426 = sbr.rel (%p423_p9) target bundleno = 1056 (0x420), region = 72  ;;  %s2710_s0 = sld [smem:[#allocation10_spill]] (!%p423_p9) }
  0x18   : > { %p474_p10 = scmp.lt.s32.totalorder (!%p423_p9), %s473_s27, 37  ;;  %s2711_s3 = sld [smem:[#allocation13_spill]] (!%p423_p9) }
  0x19   : > { %s2712_s2 = sld [smem:[#allocation12_spill]] (!%p423_p9)  ;;  %s2699_s18 = smul.u32 (!%p423_p9), 76, %s2255_s17 }
  0x1a   : > { %s2713_s4 = sld [smem:[#allocation14_spill]] (!%p423_p9) }
  0x1b   : > { %s1550_s21 = scalar_lea.hbm (!%p423_p9), %s2697_s14, %s2699_s18  ;;  %s2081_s18 = scalar_lea.hbm (!%p423_p9), %s2697_s14, 152 }
  0x1c   : > { %v1847_v0 = vld [vmem:[%s2709_s1 + $0x18] sm:$0xff]  ;;  %v1846_v1 = vld [vmem:[%s2709_s1 + $0x10] sm:$0xff]  ;;  %s2721_s27 = smov (!%p474_p10, %s473_s27), 37  ;;  %v1845_v2 = vld [vmem:[%s2709_s1 + $0x8] sm:$0xff]  ;;  %vm547_vm0 = vcmask 523264  }
  0x1d   : > { %582 = vmatpush.bf16.msra.mxu0 %v1847_v0  ;;  %1996 = vmatpush.bf16.msra.mxu3 %v1847_v0  ;;  %s1653_s22 = sshll.u32 %s2721_s27, 3  ;;  %v1844_v3 = vld [vmem:[%s2709_s1] sm:$0xff] }
  0x1e   : > { %s2295_s26 = scalar_lea.vmem %s2710_s0, %s1653_s22  ;;  %v1855_v19 = vld [vmem:[%s2711_s3 + $0x38] sm:$0xff]  ;;  %v1854_v20 = vld [vmem:[%s2711_s3 + $0x30] sm:$0xff]  ;;  %v1853_v21 = vld [vmem:[%s2711_s3 + $0x28] sm:$0xff] }
  0x1f   : > { %v482_v4 = vld [vmem:[%s2295_s26] sm:$0xff]  ;;  %v483_v5 = vld [vmem:[%s2295_s26 + $0x8] sm:$0xff]  ;;  %v484_v7 = vld [vmem:[%s2295_s26 + $0x10] sm:$0xff]  ;;  %733 = vmatpush.bf16.msra.mxu1 %v1855_v19  ;;  %2000 = vmatpush.bf16.msra.mxu2 %v1855_v19 }
  0x20   : > { %v501_v6 = vpack.c.bf16 %v483_v5, %v482_v4  ;;  %v485_v8 = vld [vmem:[%s2295_s26 + $0x18] sm:$0xff]  ;;  %v486_v10 = vld [vmem:[%s2295_s26 + $0x20] sm:$0xff]  ;;  %v487_v11 = vld [vmem:[%s2295_s26 + $0x28] sm:$0xff] }
  0x21   : > { %583 = vmatpush.bf16.msra.mxu0 %v1846_v1  ;;  %1997 = vmatpush.bf16.msra.mxu3 %v1846_v1  ;;  %v502_v9 = vpack.c.bf16 %v485_v8, %v484_v7  ;;  %v503_v12 = vpack.c.bf16 %v487_v11, %v486_v10  ;;  %v488_v13 = vld [vmem:[%s2295_s26 + $0x30] sm:$0xff]  ;;  %v489_v14 = vld [vmem:[%s2295_s26 + $0x38] sm:$0xff]  ;;  %v494_v16 = vld [vmem:[%s2295_s26 + $0x60] sm:$0xff] }
  0x22   : > { %v504_v15 = vpack.c.bf16 %v489_v14, %v488_v13  ;;  %v495_v17 = vld [vmem:[%s2295_s26 + $0x68] sm:$0xff]  ;;  %v490_v22 = vld [vmem:[%s2295_s26 + $0x40] sm:$0xff]  ;;  %v496_v25 = vld [vmem:[%s2295_s26 + $0x70] sm:$0xff] }
  0x23   : > { %v507_v18 = vpack.c.bf16 %v495_v17, %v494_v16  ;;  %734 = vmatpush.bf16.msra.mxu1 %v1854_v20  ;;  %2001 = vmatpush.bf16.msra.mxu2 %v1854_v20  ;;  %v491_v23 = vld [vmem:[%s2295_s26 + $0x48] sm:$0xff]  ;;  %v1852_v24 = vld [vmem:[%s2711_s3 + $0x20] sm:$0xff]  ;;  %v497_v26 = vld [vmem:[%s2295_s26 + $0x78] sm:$0xff] }
  0x24   : > { %v505_v27 = vpack.c.bf16 %v491_v23, %v490_v22  ;;  %v508_v28 = vpack.c.bf16 %v497_v26, %v496_v25  ;;  %v492_v29 = vld [vmem:[%s2295_s26 + $0x50] sm:$0xff]  ;;  %v493_v30 = vld [vmem:[%s2295_s26 + $0x58] sm:$0xff]  ;;  %v498_v31 = vld [vmem:[%s2295_s26 + $0x80] sm:$0xff] }
  0x25   : > { %584 = vmatpush.bf16.msra.mxu0 %v1845_v2  ;;  %1998 = vmatpush.bf16.msra.mxu3 %v1845_v2  ;;  %v499_v32 = vld [vmem:[%s2295_s26 + $0x88] sm:$0xff]  ;;  %v506_v33 = vpack.c.bf16 %v493_v30, %v492_v29  ;;  %v1851_v35 = vld [vmem:[%s2711_s3 + $0x18] sm:$0xff]  ;;  %v1850_v36 = vld [vmem:[%s2711_s3 + $0x10] sm:$0xff] }
  0x26   : > { %v509_v34 = vpack.c.bf16 %v499_v32, %v498_v31  ;;  %v1849_v37 = vld [vmem:[%s2711_s3 + $0x8] sm:$0xff]  ;;  %v1848_v38 = vld [vmem:[%s2711_s3] sm:$0xff]  ;;  %v500_v39 = vld [vmem:[%s2295_s26 + $0x90] sm:$0xff]  ;;  %s2455_s26 = sand.u32 1, %s2147_s30  }
  0x27   : > { %735 = vmatpush.bf16.msra.mxu1 %v1853_v21  ;;  %2002 = vmatpush.bf16.msra.mxu2 %v1853_v21  ;;  %v510_v40 = vpack.c.bf16 %v500_v39, %v500_v39  ;;  %v2356_v42 = vld [vmem:[%s2712_s2] ss:$0 sm:$0xff]  ;;  %v1863_v7 = vld [vmem:[%s2688_s5 + $0x38] sm:$0xff]  ;;  %v1862_v10 = vld [vmem:[%s2688_s5 + $0x30] sm:$0xff]  ;;  %s2008_s27 = smul.u32 76, %s2455_s26  ;;  %s1522_s0 = scalar_lea.sflag [#allocation5], %s2455_s26 }
  0x28   : > { %v1860_v20 = vld [vmem:[%s2688_s5 + $0x20] sm:$0xff]  ;;  %v1859_v29 = vld [vmem:[%s2688_s5 + $0x18] sm:$0xff] }
  0x29   : > { %585 = vmatpush.bf16.msra.mxu0 %v1844_v3  ;;  %1999 = vmatpush.bf16.msra.mxu3 %v1844_v3  ;;  %s2462_s20 = scalar_lea.vmem [#allocation4], %s2008_s27  ;;  %s2596_s28 = scalar_lea.vmem [#allocation2], %s2008_s27 }
  0x2a   : > { %s1551_s25 = sshll.u32 %s2462_s20, 4  ;;  %s1553_s27 = sshll.u32 %s1550_s21, 4  ;;  %s1552_s25 = int_to_ptr.vmem [resolvable:$true] %s1551_s25  ;;  %s1554_s27 = int_to_ptr.hbm [resolvable:$true] %s1553_s27 }
  0x2b   : > { %736 = vmatpush.bf16.msra.mxu1 %v1852_v24  ;;  %2003 = vmatpush.bf16.msra.mxu2 %v1852_v24  ;;  %s2075_s1 = sshra.s32 %s1554_s27, 4  ;;  %s2076_s1 = int_to_ptr.hbm [resolvable:$true] %s2075_s1 }
  0x2c   : > { %1670 = vmatmul.msk.bf16.vlgmr.msra.gmra.mxu0 %vm547_vm0, %v501_v6  ;;  %1676 = vmatmul.msk.bf16.vlgmr.msra.gmra.mxu3 %vm547_vm0, %v507_v18  ;;  %v1861_v18 = vld [vmem:[%s2688_s5 + $0x28] sm:$0xff]  ;;  %s2077_s2 = scalar_lea.hbm %s2076_s1, 76  ;;  %p2082_p0 = scmp.lt.s32.totalorder %s2076_s1, %s2697_s14 }
  0x2d   : > { %p2078_p11 = scmp.ne.s32.totalorder %s2076_s1, %s2077_s2  ;;  %p2083_p1 = scmp.lt.s32.totalorder %s2081_s18, %s2077_s2 }
  0x2f   : > { %737 = vmatpush.bf16.msra.mxu1 %v1851_v35  ;;  %2004 = vmatpush.bf16.msra.mxu2 %v1851_v35  ;;  %p2079_p12 = pnand %p2078_p11, %p2272_p5  ;;  %p2084_p2 = por %p2083_p1, %p2082_p0 }
  0x31   : > { %p2080_p13 = pneg %p2079_p12 }
  0x33   : > { %738 = vmatpush.bf16.msra.mxu1 %v1850_v36  ;;  %2005 = vmatpush.bf16.msra.mxu2 %v1850_v36  ;;  %v1858_v36 = vld [vmem:[%s2688_s5 + $0x10] sm:$0xff]  ;;  %p2085_p3 = pnand %p2084_p2, %p2080_p13 }
  0x37   : > { %739 = vmatpush.bf16.msra.mxu1 %v1849_v37  ;;  %2006 = vmatpush.bf16.msra.mxu2 %v1849_v37 }
  0x3b   : > { %740 = vmatpush.bf16.msra.mxu1 %v1848_v38  ;;  %2007 = vmatpush.bf16.msra.mxu2 %v1848_v38 }
  0x3c   : > { %1671 = vmatmul.msk.bf16.gmra.mxu0 %vm547_vm0, %v502_v9  ;;  %1677 = vmatmul.msk.bf16.gmra.mxu3 %vm547_vm0, %v508_v28 }
  0x3f   : > { %888 = vmatpush.bf16.msrb.mxu2 %v1863_v7 }
  0x43   : > { %889 = vmatpush.bf16.msrb.mxu2 %v1862_v10 }
  0x47   : > { %890 = vmatpush.bf16.msrb.mxu2 %v1861_v18 }
  0x4b   : > { %891 = vmatpush.bf16.msrb.mxu2 %v1860_v20 }
  0x4c   : > { %1672 = vmatmul.msk.bf16.gmra.mxu0 %vm547_vm0, %v503_v12  ;;  %1678 = vmatmul.msk.bf16.gmra.mxu3 %vm547_vm0, %v509_v34 }
  0x4f   : > { %892 = vmatpush.bf16.msrb.mxu2 %v1859_v29  ;;  %v1870_v29 = vld [vmem:[%s2690_s7 + $0x30] sm:$0xff] }
  0x53   : > { %893 = vmatpush.bf16.msrb.mxu2 %v1858_v36 }
  0x5c   : > { %1673 = vmatmul.msk.bf16.gmra.mxu0 %vm547_vm0, %v504_v15  ;;  %1679 = vmatmul.msk.bf16.gmra.mxu3 %vm547_vm0, %v510_v40  ;;  %v1857_v40 = vld [vmem:[%s2688_s5 + $0x8] sm:$0xff] }
  0x5d   : > { %894 = vmatpush.bf16.msrb.mxu2 %v1857_v40 }
  0x6c   : > { %1674 = vmatmul.msk.bf16.gmra.mxu0 %vm547_vm0, %v505_v27 }
  0x7c   : > { %1675 = vmatmul.msk.bf16.gmra.mxu0 %vm547_vm0, %v506_v33 }
  0xa9   : > { %v587_v41 = vpop.f32.mrf.mxu0 }
  0xaa   : > { %v588_v43 = vadd.f32 %v2356_v42, %v587_v41 }
  0xac   : > { %v636_v46 = vmax.f32 %v588_v43, 0.0 }
  0xaf   : > { %v617_v2 = vpop.f32.mrf.mxu3 }
  0xb0   : > { %v618_v30 = vadd.f32 %v2356_v42, %v617_v2 }
  0xb1   : > { %v589_v44 = vpop.f32.mrf.mxu0 }
  0xb2   : > { %v590_v45 = vadd.f32 %v2356_v42, %v589_v44  ;;  %v648_v33 = vmax.f32 %v618_v30, 0.0 }
  0xb4   : > { %v637_v47 = vmax.f32 %v590_v45, 0.0 }
  0xb6   : > { %v655_v48 = vpack.c.bf16 %v637_v47, %v636_v46 }
  0xb7   : > { %v619_v9 = vpop.f32.mrf.mxu3 }
  0xb8   : > { %741 = vmatmul.bf16.vlgmr.msra.gmra.mxu1 %v655_v48  ;;  %v620_v31 = vadd.f32 %v2356_v42, %v619_v9  ;;  %v1856_v48 = vld [vmem:[%s2688_s5] sm:$0xff] }
  0xb9   : > { %v592_v49 = vpop.f32.mrf.mxu0  ;;  %895 = vmatpush.bf16.msrb.mxu2 %v1856_v48 }
  0xba   : > { %v593_v50 = vadd.f32 %v2356_v42, %v592_v49  ;;  %v649_v34 = vmax.f32 %v620_v31, 0.0 }
  0xbc   : > { %v638_v53 = vmax.f32 %v593_v50, 0.0  ;;  %v661_v35 = vpack.c.bf16 %v649_v34, %v648_v33 }
  0xbf   : > { %v622_v14 = vpop.f32.mrf.mxu3 }
  0xc0   : > { %v623_v38 = vadd.f32 %v2356_v42, %v622_v14 }
  0xc1   : > { %v594_v51 = vpop.f32.mrf.mxu0 }
  0xc2   : > { %v595_v52 = vadd.f32 %v2356_v42, %v594_v51  ;;  %v650_v43 = vmax.f32 %v623_v38, 0.0  ;;  %v1868_v38 = vld [vmem:[%s2690_s7 + $0x20] sm:$0xff] }
  0xc4   : > { %v639_v54 = vmax.f32 %v595_v52, 0.0 }
  0xc6   : > { %v656_v55 = vpack.c.bf16 %v639_v54, %v638_v53 }
  0xc7   : > { %v624_v21 = vpop.f32.mrf.mxu3 }
  0xc8   : > { %746 = vmatmul.bf16.gmra.mxu1 %v656_v55  ;;  %v625_v39 = vadd.f32 %v2356_v42, %v624_v21 }
  0xc9   : > { %v597_v56 = vpop.f32.mrf.mxu0 }
  0xca   : > { %v598_v57 = vadd.f32 %v2356_v42, %v597_v56  ;;  %v651_v44 = vmax.f32 %v625_v39, 0.0 }
  0xcc   : > { %v640_v60 = vmax.f32 %v598_v57, 0.0  ;;  %v662_v45 = vpack.c.bf16 %v651_v44, %v650_v43  ;;  %v1867_v43 = vld [vmem:[%s2690_s7 + $0x18] sm:$0xff] }
  0xcf   : > { %v627_v28 = vpop.f32.mrf.mxu3 }
  0xd0   : > { %v628_v46 = vadd.f32 %v2356_v42, %v627_v28 }
  0xd1   : > { %v599_v58 = vpop.f32.mrf.mxu0 }
  0xd2   : > { %v600_v59 = vadd.f32 %v2356_v42, %v599_v58  ;;  %v652_v49 = vmax.f32 %v628_v46, 0.0  ;;  %v2404_v58 = vld [vmem:[%s2713_s4] ss:$0 sm:$0xff]  ;;  %v1866_v46 = vld [vmem:[%s2690_s7 + $0x10] sm:$0xff] }
  0xd4   : > { %v641_v61 = vmax.f32 %v600_v59, 0.0 }
  0xd6   : > { %v657_v62 = vpack.c.bf16 %v641_v61, %v640_v60 }
  0xd7   : > { %v629_v32 = vpop.f32.mrf.mxu3 }
  0xd8   : > { %751 = vmatmul.bf16.gmra.mxu1 %v657_v62  ;;  %v630_v47 = vadd.f32 %v2356_v42, %v629_v32  ;;  %v1869_v32 = vld [vmem:[%s2690_s7 + $0x28] sm:$0xff] }
  0xd9   : > { %v602_v63 = vpop.f32.mrf.mxu0 }
  0xda   : > { %v603_v0 = vadd.f32 %v2356_v42, %v602_v63  ;;  %v653_v50 = vmax.f32 %v630_v47, 0.0 }
  0xdc   : > { %v642_v4 = vmax.f32 %v603_v0, 0.0  ;;  %v663_v52 = vpack.c.bf16 %v653_v50, %v652_v49 }
  0xdf   : > { %v632_v37 = vpop.f32.mrf.mxu3 }
  0xe0   : > { %v633_v53 = vadd.f32 %v2356_v42, %v632_v37 }
  0xe1   : > { %v604_v1 = vpop.f32.mrf.mxu0 }
  0xe2   : > { %v605_v3 = vadd.f32 %v2356_v42, %v604_v1  ;;  %v654_v55 = vmax.f32 %v633_v53, 0.0 }
  0xe4   : > { %v643_v5 = vmax.f32 %v605_v3, 0.0  ;;  %v664_v56 = vpack.c.bf16 %v654_v55, %v654_v55 }
  0xe6   : > { %v658_v6 = vpack.c.bf16 %v643_v5, %v642_v4 }
  0xe7   : > { %v634_v41 = vpop.f32.mrf.mxu3 }
  0xe8   : > { %756 = vmatmul.bf16.gmra.mxu1 %v658_v6 }
  0xe9   : > { %v607_v8 = vpop.f32.mrf.mxu0 }
  0xea   : > { %v608_v11 = vadd.f32 %v2356_v42, %v607_v8 }
  0xec   : > { %v644_v15 = vmax.f32 %v608_v11, 0.0 }
  0xf1   : > { %v609_v12 = vpop.f32.mrf.mxu0 }
  0xf2   : > { %v610_v13 = vadd.f32 %v2356_v42, %v609_v12 }
  0xf4   : > { %v645_v16 = vmax.f32 %v610_v13, 0.0 }
  0xf6   : > { %v659_v17 = vpack.c.bf16 %v645_v16, %v644_v15 }
  0xf8   : > { %761 = vmatmul.bf16.gmra.mxu1 %v659_v17 }
  0xf9   : > { %v612_v19 = vpop.f32.mrf.mxu0 }
  0xfa   : > { %v613_v22 = vadd.f32 %v2356_v42, %v612_v19 }
  0xfc   : > { %v646_v25 = vmax.f32 %v613_v22, 0.0 }
 0x101   : > { %v614_v23 = vpop.f32.mrf.mxu0 }
 0x102   : > { %v615_v24 = vadd.f32 %v2356_v42, %v614_v23  ;;  %v1871_v23 = vld [vmem:[%s2690_s7 + $0x38] sm:$0xff] }
 0x103   : > { %1110 = vmatpush.bf16.msrb.mxu3 %v1871_v23 }
 0x104   : > { %v647_v26 = vmax.f32 %v615_v24, 0.0 }
 0x106   : > { %v660_v27 = vpack.c.bf16 %v647_v26, %v646_v25 }
 0x107   : > { %1111 = vmatpush.bf16.msrb.mxu3 %v1870_v29 }
 0x108   : > { %766 = vmatmul.bf16.vlgmr.msra.gmra.mxu2 %v660_v27 }
 0x10b   : > { %1112 = vmatpush.bf16.msrb.mxu3 %v1869_v32 }
 0x10f   : > { %1113 = vmatpush.bf16.msrb.mxu3 %v1868_v38 }
 0x113   : > { %1114 = vmatpush.bf16.msrb.mxu3 %v1867_v43 }
 0x117   : > { %1115 = vmatpush.bf16.msrb.mxu3 %v1866_v46  ;;  %v1877_v46 = vld [vmem:[%s2692_s9 + $0x28] sm:$0xff] }
 0x118   : > { %771 = vmatmul.bf16.gmra.mxu2 %v661_v35 }
 0x128   : > { %776 = vmatmul.bf16.gmra.mxu2 %v662_v45 }
 0x135   : > { %v742_v51 = vpop.f32.mrf.mxu1 }
 0x136   : > { %v743_v61 = vadd.f32 %v2404_v58, %v742_v51 }
 0x138   : > { %781 = vmatmul.bf16.gmra.mxu2 %v663_v52  ;;  %v791_v63 = vmax.f32 %v743_v61, 0.0  ;;  %v1865_v52 = vld [vmem:[%s2690_s7 + $0x8] sm:$0xff] }
 0x139   : > { %1116 = vmatpush.bf16.msrb.mxu3 %v1865_v52 }
 0x13d   : > { %v744_v54 = vpop.f32.mrf.mxu1 }
 0x13e   : > { %v745_v59 = vadd.f32 %v2404_v58, %v744_v54 }
 0x140   : > { %v792_v62 = vmax.f32 %v745_v59, 0.0 }
 0x142   : > { %v810_v0 = vpack.c.bf16 %v792_v62, %v791_v63 }
 0x145   : > { %v747_v57 = vpop.f32.mrf.mxu1 }
 0x146   : > { %v748_v2 = vadd.f32 %v2404_v58, %v747_v57  ;;  %v1864_v57 = vld [vmem:[%s2690_s7] sm:$0xff] }
 0x147   : > { %1117 = vmatpush.bf16.msrb.mxu3 %v1864_v57 }
 0x148   : > { %786 = vmatmul.bf16.gmra.mxu2 %v664_v56  ;;  %v793_v5 = vmax.f32 %v748_v2, 0.0  ;;  %v2451_v2 = vld [vmem:[%s2689_s6] ss:$0 sm:$0xff] }
 0x14d   : > { %v749_v60 = vpop.f32.mrf.mxu1 }
 0x14e   : > { %v750_v1 = vadd.f32 %v2404_v58, %v749_v60 }
 0x150   : > { %v794_v3 = vmax.f32 %v750_v1, 0.0 }
 0x152   : > { %v811_v6 = vpack.c.bf16 %v794_v3, %v793_v5 }
 0x155   : > { %v752_v42 = vpop.f32.mrf.mxu1 }
 0x156   : > { %v753_v9 = vadd.f32 %v2404_v58, %v752_v42 }
 0x158   : > { %896 = vmatmul.bf16.vlgmr.msrb.gmra.mxu2 %v810_v0  ;;  %v795_v11 = vmax.f32 %v753_v9, 0.0 }
 0x15d   : > { %v754_v4 = vpop.f32.mrf.mxu1 }
 0x15e   : > { %v755_v8 = vadd.f32 %v2404_v58, %v754_v4 }
 0x160   : > { %v796_v10 = vmax.f32 %v755_v8, 0.0 }
 0x162   : > { %v812_v12 = vpack.c.bf16 %v796_v10, %v795_v11 }
 0x165   : > { %v757_v7 = vpop.f32.mrf.mxu1 }
 0x166   : > { %v758_v15 = vadd.f32 %v2404_v58, %v757_v7 }
 0x168   : > { %901 = vmatmul.bf16.gmra.mxu2 %v811_v6  ;;  %v797_v18 = vmax.f32 %v758_v15, 0.0 }
 0x16d   : > { %v759_v13 = vpop.f32.mrf.mxu1 }
 0x16e   : > { %v760_v14 = vadd.f32 %v2404_v58, %v759_v13 }
 0x170   : > { %v798_v17 = vmax.f32 %v760_v14, 0.0 }
 0x172   : > { %v813_v19 = vpack.c.bf16 %v798_v17, %v797_v18 }
 0x175   : > { %v762_v16 = vpop.f32.mrf.mxu1 }
 0x176   : > { %v763_v24 = vadd.f32 %v2404_v58, %v762_v16 }
 0x178   : > { %906 = vmatmul.bf16.gmra.mxu2 %v812_v12  ;;  %v799_v27 = vmax.f32 %v763_v24, 0.0 }
 0x17d   : > { %v764_v20 = vpop.f32.mrf.mxu1 }
 0x17e   : > { %v765_v22 = vadd.f32 %v2404_v58, %v764_v20 }
 0x180   : > { %v800_v25 = vmax.f32 %v765_v22, 0.0 }
 0x182   : > { %v814_v28 = vpack.c.bf16 %v800_v25, %v799_v27 }
 0x188   : > { %911 = vmatmul.bf16.gmra.mxu2 %v813_v19 }
 0x18b   : > { %v767_v21 = vpop.f32.mrf.mxu2 }
 0x18c   : > { %v768_v33 = vadd.f32 %v2404_v58, %v767_v21 }
 0x18e   : > { %v801_v36 = vmax.f32 %v768_v33, 0.0 }
 0x193   : > { %v769_v26 = vpop.f32.mrf.mxu2 }
 0x194   : > { %v770_v31 = vadd.f32 %v2404_v58, %v769_v26  ;;  %v1879_v26 = vld [vmem:[%s2692_s9 + $0x38] sm:$0xff] }
 0x195   : > { %1265 = vmatpush.bf16.msrb.mxu0 %v1879_v26 }
 0x196   : > { %v802_v34 = vmax.f32 %v770_v31, 0.0 }
 0x198   : > { %916 = vmatmul.bf16.gmra.mxu2 %v814_v28  ;;  %v815_v37 = vpack.c.bf16 %v802_v34, %v801_v36  ;;  %v1878_v34 = vld [vmem:[%s2692_s9 + $0x30] sm:$0xff] }
 0x199   : > { %1266 = vmatpush.bf16.msrb.mxu0 %v1878_v34 }
 0x19b   : > { %v772_v30 = vpop.f32.mrf.mxu2 }
 0x19c   : > { %v773_v41 = vadd.f32 %v2404_v58, %v772_v30 }
 0x19d   : > { %1267 = vmatpush.bf16.msrb.mxu0 %v1877_v46 }
 0x19e   : > { %v803_v47 = vmax.f32 %v773_v41, 0.0 }
 0x1a3   : > { %v774_v35 = vpop.f32.mrf.mxu2 }
 0x1a4   : > { %v775_v40 = vadd.f32 %v2404_v58, %v774_v35 }
 0x1a6   : > { %v804_v44 = vmax.f32 %v775_v40, 0.0 }
 0x1a8   : > { %921 = vmatmul.bf16.gmra.mxu2 %v815_v37  ;;  %v816_v48 = vpack.c.bf16 %v804_v44, %v803_v47 }
 0x1ab   : > { %v777_v39 = vpop.f32.mrf.mxu2 }
 0x1ac   : > { %v778_v51 = vadd.f32 %v2404_v58, %v777_v39 }
 0x1ae   : > { %v805_v55 = vmax.f32 %v778_v51, 0.0 }
 0x1b3   : > { %v779_v45 = vpop.f32.mrf.mxu2 }
 0x1b4   : > { %v780_v50 = vadd.f32 %v2404_v58, %v779_v45 }
 0x1b6   : > { %v806_v53 = vmax.f32 %v780_v50, 0.0  ;;  %v1876_v50 = vld [vmem:[%s2692_s9 + $0x20] sm:$0xff] }
 0x1b7   : > { %1268 = vmatpush.bf16.msrb.mxu0 %v1876_v50 }
 0x1b8   : > { %926 = vmatmul.bf16.gmra.mxu2 %v816_v48  ;;  %v817_v56 = vpack.c.bf16 %v806_v53, %v805_v55 }
 0x1bb   : > { %v782_v49 = vpop.f32.mrf.mxu2 }
 0x1bc   : > { %v783_v61 = vadd.f32 %v2404_v58, %v782_v49 }
 0x1be   : > { %v807_v0 = vmax.f32 %v783_v61, 0.0 }
 0x1c3   : > { %v784_v54 = vpop.f32.mrf.mxu2 }
 0x1c4   : > { %v785_v60 = vadd.f32 %v2404_v58, %v784_v54 }
 0x1c6   : > { %v808_v62 = vmax.f32 %v785_v60, 0.0 }
 0x1c8   : > { %931 = vmatmul.bf16.gmra.mxu2 %v817_v56  ;;  %v818_v42 = vpack.c.bf16 %v808_v62, %v807_v0  ;;  %v1875_v62 = vld [vmem:[%s2692_s9 + $0x18] sm:$0xff] }
 0x1c9   : > { %1269 = vmatpush.bf16.msrb.mxu0 %v1875_v62 }
 0x1cb   : > { %v787_v59 = vpop.f32.mrf.mxu2 }
 0x1cc   : > { %v788_v3 = vadd.f32 %v2404_v58, %v787_v59 }
 0x1ce   : > { %v809_v5 = vmax.f32 %v788_v3, 0.0 }
 0x1d0   : > { %v819_v9 = vpack.c.bf16 %v809_v5, %v809_v5 }
 0x1d3   : > { %v789_v63 = vpop.f32.mrf.mxu2 }
 0x1d8   : > { %936 = vmatmul.bf16.gmra.mxu2 %v818_v42 }
 0x1db   : > { %v897_v1 = vpop.f32.mrf.mxu2 }
 0x1dc   : > { %v898_v4 = vadd.f32 %v2451_v2, %v897_v1 }
 0x1de   : > { %v946_v7 = vpack.c.bf16 %v898_v4, %v898_v4 }
 0x1e0   : > { %v1023_v12 = vunpack.c.l.b16 %v946_v7 }
 0x1e3   : > { %v899_v6 = vpop.f32.mrf.mxu2 }
 0x1e4   : > { %v900_v8 = vadd.f32 %v2451_v2, %v899_v6  ;;  %v1874_v6 = vld [vmem:[%s2692_s9 + $0x10] sm:$0xff] }
 0x1e5   : > { %1270 = vmatpush.bf16.msrb.mxu0 %v1874_v6  ;;  %v1886_v6 = vld [vmem:[%s2694_s11 + $0x30] sm:$0xff] }
 0x1e6   : > { %v947_v10 = vpack.c.bf16 %v900_v8, %v900_v8  ;;  %v1893_v11 = vpack.c.bf16 %v900_v8, %v898_v4 }
 0x1e8   : > { %1894 = vst [vmem:[%s2462_s20] sm:$0xff] %v1893_v11   ;;  %v1024_v58 = vunpack.c.l.b16 %v947_v10  ;;  %941 = vmatmul.bf16.gmra.mxu2 %v819_v9 }
 0x1ea   : > { %v1042_v13 = vpack.c.b16 %v1024_v58, %v1023_v12 }
 0x1eb   : > { %v902_v14 = vpop.f32.mrf.mxu2 }
 0x1ec   : > { %1118 = vmatmul.bf16.vlgmr.msrb.gmra.mxu3 %v1042_v13  ;;  %v903_v15 = vadd.f32 %v2451_v2, %v902_v14 }
 0x1ee   : > { %v948_v17 = vpack.c.bf16 %v903_v15, %v903_v15 }
 0x1f0   : > { %v1025_v21 = vunpack.c.l.b16 %v948_v17 }
 0x1f3   : > { %v904_v16 = vpop.f32.mrf.mxu2 }
 0x1f4   : > { %v905_v18 = vadd.f32 %v2451_v2, %v904_v16  ;;  %v1873_v16 = vld [vmem:[%s2692_s9 + $0x8] sm:$0xff] }
 0x1f5   : > { %1271 = vmatpush.bf16.msrb.mxu0 %v1873_v16 }
 0x1f6   : > { %v949_v19 = vpack.c.bf16 %v905_v18, %v905_v18  ;;  %v1898_v20 = vpack.c.bf16 %v905_v18, %v903_v15 }
 0x1f8   : > { %1980 = vst [vmem:[%s2462_s20 + $0x8] sm:$0xff] %v1898_v20   ;;  %v1026_v22 = vunpack.c.l.b16 %v949_v19  ;;  %v1872_v20 = vld [vmem:[%s2692_s9] sm:$0xff] }
 0x1f9   : > { %1272 = vmatpush.bf16.msrb.mxu0 %v1872_v20  ;;  %v1884_v20 = vld [vmem:[%s2694_s11 + $0x20] sm:$0xff] }
 0x1fa   : > { %v1043_v23 = vpack.c.b16 %v1026_v22, %v1025_v21 }
 0x1fb   : > { %v907_v24 = vpop.f32.mrf.mxu2 }
 0x1fc   : > { %1123 = vmatmul.bf16.gmra.mxu3 %v1043_v23  ;;  %v908_v25 = vadd.f32 %v2451_v2, %v907_v24 }
 0x1fe   : > { %v950_v28 = vpack.c.bf16 %v908_v25, %v908_v25 }
 0x200   : > { %v1027_v32 = vunpack.c.l.b16 %v950_v28 }
 0x203   : > { %v909_v27 = vpop.f32.mrf.mxu2 }
 0x204   : > { %v910_v29 = vadd.f32 %v2451_v2, %v909_v27 }
 0x206   : > { %v951_v30 = vpack.c.bf16 %v910_v29, %v910_v29  ;;  %v1903_v31 = vpack.c.bf16 %v910_v29, %v908_v25 }
 0x208   : > { %1981 = vst [vmem:[%s2462_s20 + $0x10] sm:$0xff] %v1903_v31   ;;  %v1028_v33 = vunpack.c.l.b16 %v951_v30 }
 0x20a   : > { %v1044_v35 = vpack.c.b16 %v1028_v33, %v1027_v32 }
 0x20b   : > { %v912_v36 = vpop.f32.mrf.mxu2 }
 0x20c   : > { %1128 = vmatmul.bf16.gmra.mxu3 %v1044_v35  ;;  %v913_v37 = vadd.f32 %v2451_v2, %v912_v36 }
 0x20e   : > { %v952_v39 = vpack.c.bf16 %v913_v37, %v913_v37 }
 0x210   : > { %v1029_v44 = vunpack.c.l.b16 %v952_v39 }
 0x213   : > { %v914_v38 = vpop.f32.mrf.mxu2 }
 0x214   : > { %v915_v40 = vadd.f32 %v2451_v2, %v914_v38 }
 0x216   : > { %v953_v41 = vpack.c.bf16 %v915_v40, %v915_v40  ;;  %v1908_v43 = vpack.c.bf16 %v915_v40, %v913_v37 }
 0x218   : > { %1982 = vst [vmem:[%s2462_s20 + $0x18] sm:$0xff] %v1908_v43   ;;  %v1030_v45 = vunpack.c.l.b16 %v953_v41 }
 0x21a   : > { %v1045_v47 = vpack.c.b16 %v1030_v45, %v1029_v44  ;;  %v2518_v44 = vld [vmem:[%s2691_s8] ss:$0 sm:$0xff] }
 0x21b   : > { %v917_v48 = vpop.f32.mrf.mxu2 }
 0x21c   : > { %1133 = vmatmul.bf16.gmra.mxu3 %v1045_v47  ;;  %v918_v49 = vadd.f32 %v2451_v2, %v917_v48 }
 0x21e   : > { %v954_v52 = vpack.c.bf16 %v918_v49, %v918_v49 }
 0x220   : > { %v1031_v56 = vunpack.c.l.b16 %v954_v52 }
 0x223   : > { %v919_v51 = vpop.f32.mrf.mxu2 }
 0x224   : > { %v920_v53 = vadd.f32 %v2451_v2, %v919_v51 }
 0x226   : > { %v955_v54 = vpack.c.bf16 %v920_v53, %v920_v53  ;;  %v1913_v55 = vpack.c.bf16 %v920_v53, %v918_v49 }
 0x228   : > { %1983 = vst [vmem:[%s2462_s20 + $0x20] sm:$0xff] %v1913_v55   ;;  %v1032_v57 = vunpack.c.l.b16 %v955_v54 }
 0x22a   : > { %v1046_v59 = vpack.c.b16 %v1032_v57, %v1031_v56 }
 0x22b   : > { %v922_v60 = vpop.f32.mrf.mxu2 }
 0x22c   : > { %1138 = vmatmul.bf16.gmra.mxu3 %v1046_v59  ;;  %v923_v61 = vadd.f32 %v2451_v2, %v922_v60 }
 0x22e   : > { %v956_v0 = vpack.c.bf16 %v923_v61, %v923_v61 }
 0x230   : > { %v1033_v4 = vunpack.c.l.b16 %v956_v0 }
 0x233   : > { %v924_v63 = vpop.f32.mrf.mxu2 }
 0x234   : > { %v925_v42 = vadd.f32 %v2451_v2, %v924_v63 }
 0x236   : > { %v957_v1 = vpack.c.bf16 %v925_v42, %v925_v42  ;;  %v1918_v3 = vpack.c.bf16 %v925_v42, %v923_v61 }
 0x238   : > { %1984 = vst [vmem:[%s2462_s20 + $0x28] sm:$0xff] %v1918_v3   ;;  %v1034_v5 = vunpack.c.l.b16 %v957_v1  ;;  %v1887_v3 = vld [vmem:[%s2694_s11 + $0x38] sm:$0xff] }
 0x239   : > { %1420 = vmatpush.bf16.msrb.mxu1 %v1887_v3 }
 0x23a   : > { %v1047_v7 = vpack.c.b16 %v1034_v5, %v1033_v4 }
 0x23b   : > { %v927_v8 = vpop.f32.mrf.mxu2 }
 0x23c   : > { %1143 = vmatmul.bf16.gmra.mxu3 %v1047_v7  ;;  %v928_v9 = vadd.f32 %v2451_v2, %v927_v8 }
 0x23d   : > { %1421 = vmatpush.bf16.msrb.mxu1 %v1886_v6 }
 0x23e   : > { %v958_v11 = vpack.c.bf16 %v928_v9, %v928_v9 }
 0x240   : > { %v1035_v14 = vunpack.c.l.b16 %v958_v11 }
 0x243   : > { %v929_v10 = vpop.f32.mrf.mxu2 }
 0x244   : > { %v930_v12 = vadd.f32 %v2451_v2, %v929_v10 }
 0x246   : > { %v959_v58 = vpack.c.bf16 %v930_v12, %v930_v12  ;;  %v1923_v13 = vpack.c.bf16 %v930_v12, %v928_v9 }
 0x248   : > { %1985 = vst [vmem:[%s2462_s20 + $0x30] sm:$0xff] %v1923_v13   ;;  %v1036_v15 = vunpack.c.l.b16 %v959_v58  ;;  %v1885_v58 = vld [vmem:[%s2694_s11 + $0x28] sm:$0xff] }
 0x249   : > { %1422 = vmatpush.bf16.msrb.mxu1 %v1885_v58 }
 0x24a   : > { %v1048_v17 = vpack.c.b16 %v1036_v15, %v1035_v14 }
 0x24b   : > { %v932_v18 = vpop.f32.mrf.mxu2 }
 0x24c   : > { %1148 = vmatmul.bf16.gmra.mxu3 %v1048_v17  ;;  %v933_v19 = vadd.f32 %v2451_v2, %v932_v18 }
 0x24d   : > { %1423 = vmatpush.bf16.msrb.mxu1 %v1884_v20 }
 0x24e   : > { %v960_v22 = vpack.c.bf16 %v933_v19, %v933_v19 }
 0x250   : > { %v1037_v26 = vunpack.c.l.b16 %v960_v22  ;;  %v1883_v22 = vld [vmem:[%s2694_s11 + $0x18] sm:$0xff] }
 0x251   : > { %1424 = vmatpush.bf16.msrb.mxu1 %v1883_v22 }
 0x253   : > { %v934_v21 = vpop.f32.mrf.mxu2 }
 0x254   : > { %v935_v23 = vadd.f32 %v2451_v2, %v934_v21 }
 0x256   : > { %v961_v24 = vpack.c.bf16 %v935_v23, %v935_v23  ;;  %v1928_v25 = vpack.c.bf16 %v935_v23, %v933_v19 }
 0x258   : > { %1986 = vst [vmem:[%s2462_s20 + $0x38] sm:$0xff] %v1928_v25   ;;  %v1038_v27 = vunpack.c.l.b16 %v961_v24 }
 0x25a   : > { %v1049_v28 = vpack.c.b16 %v1038_v27, %v1037_v26 }
 0x25b   : > { %v937_v29 = vpop.f32.mrf.mxu2 }
 0x25c   : > { %1153 = vmatmul.bf16.gmra.mxu3 %v1049_v28  ;;  %v938_v30 = vadd.f32 %v2451_v2, %v937_v29  ;;  %v1882_v29 = vld [vmem:[%s2694_s11 + $0x10] sm:$0xff] }
 0x25d   : > { %1425 = vmatpush.bf16.msrb.mxu1 %v1882_v29 }
 0x25e   : > { %v962_v32 = vpack.c.bf16 %v938_v30, %v938_v30 }
 0x260   : > { %v1039_v36 = vunpack.c.l.b16 %v962_v32 }
 0x263   : > { %v939_v31 = vpop.f32.mrf.mxu2 }
 0x264   : > { %v940_v33 = vadd.f32 %v2451_v2, %v939_v31  ;;  %v1881_v31 = vld [vmem:[%s2694_s11 + $0x8] sm:$0xff] }
 0x265   : > { %1426 = vmatpush.bf16.msrb.mxu1 %v1881_v31 }
 0x266   : > { %v963_v34 = vpack.c.bf16 %v940_v33, %v940_v33  ;;  %v1933_v35 = vpack.c.bf16 %v940_v33, %v938_v30 }
 0x268   : > { %1987 = vst [vmem:[%s2462_s20 + $0x40] sm:$0xff] %v1933_v35   ;;  %v1040_v37 = vunpack.c.l.b16 %v963_v34 }
 0x26a   : > { %v1050_v38 = vpack.c.b16 %v1040_v37, %v1039_v36 }
 0x26b   : > { %v942_v39 = vpop.f32.mrf.mxu2 }
 0x26c   : > { %v943_v40 = vadd.f32 %v2451_v2, %v942_v39  ;;  %1158 = vmatmul.bf16.gmra.mxu3 %v1050_v38  ;;  %v1880_v39 = vld [vmem:[%s2694_s11] sm:$0xff] }
 0x26d   : > { %1427 = vmatpush.bf16.msrb.mxu1 %v1880_v39 }
 0x26e   : > { %v964_v41 = vpack.c.bf16 %v943_v40, %v943_v40 }
 0x26f   : > { %v1119_v43 = vpop.f32.mrf.mxu3 }
 0x270   : > { %983 = vst [vmem:[%s2462_s20 + $0x48] sm:$0xf] %v964_v41  ;;  %v1041_v46 = vunpack.c.l.b16 %v964_v41  ;;  %v1120_v47 = vadd.f32 %v2518_v44, %v1119_v43 }
 0x272   : > { %v1051_v50 = vpack.c.b16 %v1041_v46, %v1041_v46  ;;  %v1168_v51 = vmax.f32 %v1120_v47, 0.0 }
 0x273   : > { %v944_v45 = vpop.f32.mrf.mxu2 }
 0x277   : > { %v1121_v48 = vpop.f32.mrf.mxu3 }
 0x278   : > { %v1122_v49 = vadd.f32 %v2518_v44, %v1121_v48 }
 0x27a   : > { %v1169_v52 = vmax.f32 %v1122_v49, 0.0 }
 0x27c   : > { %v1187_v2 = vpack.c.bf16 %v1169_v52, %v1168_v51  ;;  %1163 = vmatmul.bf16.gmra.mxu3 %v1051_v50 }
 0x27e   : > { %1273 = vmatmul.bf16.vlgmr.msrb.gmra.mxu0 %v1187_v2 }
 0x27f   : > { %v1124_v53 = vpop.f32.mrf.mxu3 }
 0x280   : > { %v1125_v54 = vadd.f32 %v2518_v44, %v1124_v53 }
 0x282   : > { %v1170_v57 = vmax.f32 %v1125_v54, 0.0 }
 0x287   : > { %v1126_v55 = vpop.f32.mrf.mxu3 }
 0x288   : > { %v1127_v56 = vadd.f32 %v2518_v44, %v1126_v55  ;;  %v2565_v55 = vld [vmem:[%s2693_s10] ss:$0 sm:$0xff] }
 0x28a   : > { %v1171_v59 = vmax.f32 %v1127_v56, 0.0 }
 0x28c   : > { %v1188_v60 = vpack.c.bf16 %v1171_v59, %v1170_v57 }
 0x28e   : > { %1278 = vmatmul.bf16.gmra.mxu0 %v1188_v60 }
 0x28f   : > { %v1129_v61 = vpop.f32.mrf.mxu3 }
 0x290   : > { %v1130_v62 = vadd.f32 %v2518_v44, %v1129_v61 }
 0x292   : > { %v1172_v42 = vmax.f32 %v1130_v62, 0.0 }
 0x297   : > { %v1131_v63 = vpop.f32.mrf.mxu3 }
 0x298   : > { %v1132_v0 = vadd.f32 %v2518_v44, %v1131_v63 }
 0x29a   : > { %v1173_v1 = vmax.f32 %v1132_v0, 0.0 }
 0x29c   : > { %v1189_v4 = vpack.c.bf16 %v1173_v1, %v1172_v42 }
 0x29e   : > { %1283 = vmatmul.bf16.gmra.mxu0 %v1189_v4 }
 0x29f   : > { %v1134_v5 = vpop.f32.mrf.mxu3 }
 0x2a0   : > { %v1135_v7 = vadd.f32 %v2518_v44, %v1134_v5 }
 0x2a2   : > { %v1174_v10 = vmax.f32 %v1135_v7, 0.0 }
 0x2a7   : > { %v1136_v8 = vpop.f32.mrf.mxu3 }
 0x2a8   : > { %v1137_v9 = vadd.f32 %v2518_v44, %v1136_v8 }
 0x2aa   : > { %v1175_v11 = vmax.f32 %v1137_v9, 0.0 }
 0x2ac   : > { %v1190_v12 = vpack.c.bf16 %v1175_v11, %v1174_v10 }
 0x2ae   : > { %1288 = vmatmul.bf16.gmra.mxu0 %v1190_v12 }
 0x2af   : > { %v1139_v13 = vpop.f32.mrf.mxu3 }
 0x2b0   : > { %v1140_v14 = vadd.f32 %v2518_v44, %v1139_v13 }
 0x2b2   : > { %v1176_v17 = vmax.f32 %v1140_v14, 0.0 }
 0x2b7   : > { %v1141_v15 = vpop.f32.mrf.mxu3 }
 0x2b8   : > { %v1142_v16 = vadd.f32 %v2518_v44, %v1141_v15 }
 0x2ba   : > { %v1177_v18 = vmax.f32 %v1142_v16, 0.0 }
 0x2bc   : > { %v1191_v19 = vpack.c.bf16 %v1177_v18, %v1176_v17 }
 0x2be   : > { %1293 = vmatmul.bf16.gmra.mxu0 %v1191_v19 }
 0x2bf   : > { %v1144_v21 = vpop.f32.mrf.mxu3 }
 0x2c0   : > { %v1145_v23 = vadd.f32 %v2518_v44, %v1144_v21 }
 0x2c2   : > { %v1178_v26 = vmax.f32 %v1145_v23, 0.0 }
 0x2c7   : > { %v1146_v24 = vpop.f32.mrf.mxu3 }
 0x2c8   : > { %v1147_v25 = vadd.f32 %v2518_v44, %v1146_v24 }
 0x2ca   : > { %v1179_v27 = vmax.f32 %v1147_v25, 0.0 }
 0x2cc   : > { %v1192_v28 = vpack.c.bf16 %v1179_v27, %v1178_v26 }
 0x2ce   : > { %1298 = vmatmul.bf16.gmra.mxu0 %v1192_v28 }
 0x2cf   : > { %v1149_v30 = vpop.f32.mrf.mxu3 }
 0x2d0   : > { %v1150_v32 = vadd.f32 %v2518_v44, %v1149_v30 }
 0x2d2   : > { %v1180_v35 = vmax.f32 %v1150_v32, 0.0 }
 0x2d7   : > { %v1151_v33 = vpop.f32.mrf.mxu3 }
 0x2d8   : > { %v1152_v34 = vadd.f32 %v2518_v44, %v1151_v33 }
 0x2da   : > { %v1181_v36 = vmax.f32 %v1152_v34, 0.0 }
 0x2dc   : > { %v1193_v37 = vpack.c.bf16 %v1181_v36, %v1180_v35 }
 0x2de   : > { %1303 = vmatmul.bf16.gmra.mxu0 %v1193_v37 }
 0x2df   : > { %v1154_v38 = vpop.f32.mrf.mxu3 }
 0x2e0   : > { %v1155_v40 = vadd.f32 %v2518_v44, %v1154_v38 }
 0x2e2   : > { %v1182_v45 = vmax.f32 %v1155_v40, 0.0 }
 0x2e7   : > { %v1156_v41 = vpop.f32.mrf.mxu3 }
 0x2e8   : > { %v1157_v43 = vadd.f32 %v2518_v44, %v1156_v41 }
 0x2ea   : > { %v1183_v46 = vmax.f32 %v1157_v43, 0.0 }
 0x2ec   : > { %v1194_v47 = vpack.c.bf16 %v1183_v46, %v1182_v45 }
 0x2ee   : > { %1308 = vmatmul.bf16.gmra.mxu0 %v1194_v47 }
 0x2ef   : > { %v1159_v48 = vpop.f32.mrf.mxu3 }
 0x2f0   : > { %v1160_v49 = vadd.f32 %v2518_v44, %v1159_v48 }
 0x2f2   : > { %v1184_v52 = vmax.f32 %v1160_v49, 0.0 }
 0x2f7   : > { %v1161_v50 = vpop.f32.mrf.mxu3 }
 0x2f8   : > { %v1162_v51 = vadd.f32 %v2518_v44, %v1161_v50 }
 0x2fa   : > { %v1185_v2 = vmax.f32 %v1162_v51, 0.0 }
 0x2fb   : > { %v1274_v53 = vpop.f32.mrf.mxu0 }
 0x2fc   : > { %v1195_v54 = vpack.c.bf16 %v1185_v2, %v1184_v52  ;;  %v1275_v57 = vadd.f32 %v2565_v55, %v1274_v53 }
 0x2fe   : > { %1313 = vmatmul.bf16.gmra.mxu0 %v1195_v54  ;;  %v1323_v62 = vmax.f32 %v1275_v57, 0.0 }
 0x2ff   : > { %v1164_v56 = vpop.f32.mrf.mxu3 }
 0x300   : > { %v1165_v60 = vadd.f32 %v2518_v44, %v1164_v56 }
 0x302   : > { %v1186_v42 = vmax.f32 %v1165_v60, 0.0 }
 0x303   : > { %v1276_v59 = vpop.f32.mrf.mxu0 }
 0x304   : > { %v1277_v61 = vadd.f32 %v2565_v55, %v1276_v59  ;;  %v1196_v4 = vpack.c.bf16 %v1186_v42, %v1186_v42 }
 0x306   : > { %v1324_v63 = vmax.f32 %v1277_v61, 0.0 }
 0x307   : > { %v1166_v0 = vpop.f32.mrf.mxu3 }
 0x308   : > { %v1342_v1 = vpack.c.bf16 %v1324_v63, %v1323_v62  ;;  %v2589_v63 = vld [vmem:[%s2695_s12] ss:$0 sm:$0xff] }
 0x30a   : > { %1428 = vmatmul.bf16.vlgmr.msrb.gmra.mxu1 %v1342_v1 }
 0x30b   : > { %v1279_v3 = vpop.f32.mrf.mxu0 }
 0x30c   : > { %v1280_v5 = vadd.f32 %v2565_v55, %v1279_v3 }
 0x30e   : > { %1318 = vmatmul.bf16.gmra.mxu0 %v1196_v4  ;;  %v1325_v8 = vmax.f32 %v1280_v5, 0.0 }
 0x313   : > { %v1281_v6 = vpop.f32.mrf.mxu0 }
 0x314   : > { %v1282_v7 = vadd.f32 %v2565_v55, %v1281_v6 }
 0x316   : > { %v1326_v9 = vmax.f32 %v1282_v7, 0.0 }
 0x318   : > { %v1343_v10 = vpack.c.bf16 %v1326_v9, %v1325_v8 }
 0x31a   : > { %1433 = vmatmul.bf16.gmra.mxu1 %v1343_v10 }
 0x31b   : > { %v1284_v44 = vpop.f32.mrf.mxu0 }
 0x31c   : > { %v1285_v11 = vadd.f32 %v2565_v55, %v1284_v44 }
 0x31e   : > { %v1327_v13 = vmax.f32 %v1285_v11, 0.0 }
 0x323   : > { %v1286_v12 = vpop.f32.mrf.mxu0 }
 0x324   : > { %v1287_v58 = vadd.f32 %v2565_v55, %v1286_v12 }
 0x326   : > { %v1328_v14 = vmax.f32 %v1287_v58, 0.0 }
 0x328   : > { %v1344_v15 = vpack.c.bf16 %v1328_v14, %v1327_v13 }
 0x32a   : > { %1438 = vmatmul.bf16.gmra.mxu1 %v1344_v15 }
 0x32b   : > { %v1289_v16 = vpop.f32.mrf.mxu0 }
 0x32c   : > { %v1290_v17 = vadd.f32 %v2565_v55, %v1289_v16 }
 0x32e   : > { %v1329_v20 = vmax.f32 %v1290_v17, 0.0 }
 0x333   : > { %v1291_v18 = vpop.f32.mrf.mxu0 }
 0x334   : > { %v1292_v19 = vadd.f32 %v2565_v55, %v1291_v18 }
 0x336   : > { %v1330_v21 = vmax.f32 %v1292_v19, 0.0 }
 0x338   : > { %v1345_v22 = vpack.c.bf16 %v1330_v21, %v1329_v20 }
 0x33a   : > { %1443 = vmatmul.bf16.gmra.mxu1 %v1345_v22 }
 0x33b   : > { %v1294_v23 = vpop.f32.mrf.mxu0 }
 0x33c   : > { %v1295_v24 = vadd.f32 %v2565_v55, %v1294_v23 }
 0x33e   : > { %v1331_v27 = vmax.f32 %v1295_v24, 0.0 }
 0x343   : > { %v1296_v25 = vpop.f32.mrf.mxu0 }
 0x344   : > { %v1297_v26 = vadd.f32 %v2565_v55, %v1296_v25 }
 0x346   : > { %v1332_v28 = vmax.f32 %v1297_v26, 0.0 }
 0x348   : > { %v1346_v29 = vpack.c.bf16 %v1332_v28, %v1331_v27 }
 0x34a   : > { %1448 = vmatmul.bf16.gmra.mxu1 %v1346_v29 }
 0x34b   : > { %v1299_v30 = vpop.f32.mrf.mxu0 }
 0x34c   : > { %v1300_v31 = vadd.f32 %v2565_v55, %v1299_v30 }
 0x34e   : > { %v1333_v34 = vmax.f32 %v1300_v31, 0.0 }
 0x353   : > { %v1301_v32 = vpop.f32.mrf.mxu0 }
 0x354   : > { %v1302_v33 = vadd.f32 %v2565_v55, %v1301_v32 }
 0x356   : > { %v1334_v35 = vmax.f32 %v1302_v33, 0.0 }
 0x358   : > { %v1347_v36 = vpack.c.bf16 %v1334_v35, %v1333_v34 }
 0x35a   : > { %1453 = vmatmul.bf16.gmra.mxu1 %v1347_v36 }
 0x35b   : > { %v1304_v37 = vpop.f32.mrf.mxu0 }
 0x35c   : > { %v1305_v38 = vadd.f32 %v2565_v55, %v1304_v37 }
 0x35e   : > { %v1335_v41 = vmax.f32 %v1305_v38, 0.0 }
 0x363   : > { %v1306_v39 = vpop.f32.mrf.mxu0 }
 0x364   : > { %v1307_v40 = vadd.f32 %v2565_v55, %v1306_v39 }
 0x366   : > { %v1336_v43 = vmax.f32 %v1307_v40, 0.0 }
 0x368   : > { %v1348_v45 = vpack.c.bf16 %v1336_v43, %v1335_v41 }
 0x36a   : > { %1458 = vmatmul.bf16.gmra.mxu1 %v1348_v45 }
 0x36b   : > { %v1309_v46 = vpop.f32.mrf.mxu0 }
 0x36c   : > { %v1310_v47 = vadd.f32 %v2565_v55, %v1309_v46 }
 0x36e   : > { %v1337_v50 = vmax.f32 %v1310_v47, 0.0 }
 0x373   : > { %v1311_v48 = vpop.f32.mrf.mxu0 }
 0x374   : > { %v1312_v49 = vadd.f32 %v2565_v55, %v1311_v48 }
 0x376   : > { %v1338_v51 = vmax.f32 %v1312_v49, 0.0 }
 0x378   : > { %v1349_v52 = vpack.c.bf16 %v1338_v51, %v1337_v50 }
 0x37a   : > { %1463 = vmatmul.bf16.gmra.mxu1 %v1349_v52 }
 0x37b   : > { %v1314_v2 = vpop.f32.mrf.mxu0 }
 0x37c   : > { %v1315_v53 = vadd.f32 %v2565_v55, %v1314_v2 }
 0x37e   : > { %v1339_v57 = vmax.f32 %v1315_v53, 0.0 }
 0x383   : > { %v1316_v54 = vpop.f32.mrf.mxu0 }
 0x384   : > { %v1317_v56 = vadd.f32 %v2565_v55, %v1316_v54 }
 0x386   : > { %v1340_v59 = vmax.f32 %v1317_v56, 0.0 }
 0x387   : > { %v1429_v60 = vpop.f32.mrf.mxu1 }
 0x388   : > { %v1350_v61 = vpack.c.bf16 %v1340_v59, %v1339_v57  ;;  %v1430_v42 = vadd.f32 %v2589_v63, %v1429_v60 }
 0x38a   : > { %1468 = vmatmul.bf16.gmra.mxu1 %v1350_v61 }
 0x38b   : > { %v1319_v62 = vpop.f32.mrf.mxu0 }
 0x38c   : > { %v1320_v1 = vadd.f32 %v2565_v55, %v1319_v62 }
 0x38e   : > { %v1341_v6 = vmax.f32 %v1320_v1, 0.0 }
 0x38f   : > { %v1431_v0 = vpop.f32.mrf.mxu1 }
 0x390   : > { %v1432_v3 = vadd.f32 %v2589_v63, %v1431_v0  ;;  %v1351_v8 = vpack.c.bf16 %v1341_v6, %v1341_v6 }
 0x392   : > { %v1938_v4 = vpack.c.bf16 %v1432_v3, %v1430_v42 }
 0x393   : > { %v1321_v5 = vpop.f32.mrf.mxu0 }
 0x394   : > { %1939 = vst [vmem:[%s2596_s28] sm:$0xff] %v1938_v4  }
 0x397   : > { %v1434_v7 = vpop.f32.mrf.mxu1 }
 0x398   : > { %v1435_v9 = vadd.f32 %v2589_v63, %v1434_v7 }
 0x39a   : > { %1473 = vmatmul.bf16.gmra.mxu1 %v1351_v8 }
 0x39f   : > { %v1436_v55 = vpop.f32.mrf.mxu1 }
 0x3a0   : > { %v1437_v10 = vadd.f32 %v2589_v63, %v1436_v55 }
 0x3a2   : > { %v1943_v44 = vpack.c.bf16 %v1437_v10, %v1435_v9 }
 0x3a3   : > { %2088 = shalt.err (!%p2085_p3)
}
 0x3a4   : > { %s2157_s20 = smov 64   ;;  %s2158_s21 = smov 4   ;;  %1988 = vst [vmem:[%s2596_s28 + $0x8] sm:$0xff] %v1943_v44  }
 0x3a5   : > { %2010 = dma.vmem_to_hbm [thread:$0]  (%p2272_p5), %s1552_s25, 1216, %s1554_s27, %s1522_s0, %s2157_s20, %s2157_s20, %s2158_s21  }
 0x3a6   : > { %s2714_s0 = smul.u32 76, %s2255_s17  ;;  %s1534_s4 = sshll.u32 %s2596_s28, 4  ;;  %s1535_s4 = int_to_ptr.vmem [resolvable:$true] %s1534_s4 }
 0x3a7   : > { %v1439_v11 = vpop.f32.mrf.mxu1  ;;  %s1517_s25 = scalar_lea.sflag [#allocation3], %s2455_s26 }
 0x3a8   : > { %v1440_v58 = vadd.f32 %v2589_v63, %v1439_v11  ;;  %s1533_s3 = scalar_lea.hbm %s2696_s13, %s2714_s0  ;;  %s2109_s0 = scalar_lea.hbm %s2696_s13, 152 }
 0x3a9   : > { %s1536_s18 = sshll.u32 %s1533_s3, 4  ;;  %s1537_s18 = int_to_ptr.hbm [resolvable:$true] %s1536_s18 }
 0x3aa   : > { %s2103_s27 = sshra.s32 %s1537_s18, 4  ;;  %s2104_s27 = int_to_ptr.hbm [resolvable:$true] %s2103_s27 }
 0x3ab   : > { %s2105_s15 = scalar_lea.hbm %s2104_s27, 76  ;;  %p2110_p9 = scmp.lt.s32.totalorder %s2104_s27, %s2696_s13 }
 0x3ac   : > { %p2106_p4 = scmp.ne.s32.totalorder %s2104_s27, %s2105_s15  ;;  %p2111_p10 = scmp.lt.s32.totalorder %s2109_s0, %s2105_s15 }
 0x3ae   : > { %p2107_p7 = pnand %p2106_p4, %p2272_p5  ;;  %p2112_p11 = por %p2111_p10, %p2110_p9 }
 0x3af   : > { %v1441_v12 = vpop.f32.mrf.mxu1 }
 0x3b0   : > { %v1442_v13 = vadd.f32 %v2589_v63, %v1441_v12  ;;  %p2108_p8 = pneg %p2107_p7 }
 0x3b2   : > { %v1948_v14 = vpack.c.bf16 %v1442_v13, %v1440_v58  ;;  %p2113_p12 = pnand %p2112_p11, %p2108_p8 }
 0x3b4   : > { %1989 = vst [vmem:[%s2596_s28 + $0x10] sm:$0xff] %v1948_v14  }
 0x3b7   : > { %v1444_v15 = vpop.f32.mrf.mxu1 }
 0x3b8   : > { %v1445_v17 = vadd.f32 %v2589_v63, %v1444_v15 }
 0x3bf   : > { %v1446_v16 = vpop.f32.mrf.mxu1 }
 0x3c0   : > { %v1447_v18 = vadd.f32 %v2589_v63, %v1446_v16 }
 0x3c2   : > { %v1953_v19 = vpack.c.bf16 %v1447_v18, %v1445_v17 }
 0x3c4   : > { %1990 = vst [vmem:[%s2596_s28 + $0x18] sm:$0xff] %v1953_v19  }
 0x3c7   : > { %v1449_v20 = vpop.f32.mrf.mxu1 }
 0x3c8   : > { %v1450_v22 = vadd.f32 %v2589_v63, %v1449_v20 }
 0x3cf   : > { %v1451_v21 = vpop.f32.mrf.mxu1 }
 0x3d0   : > { %v1452_v23 = vadd.f32 %v2589_v63, %v1451_v21 }
 0x3d2   : > { %v1958_v24 = vpack.c.bf16 %v1452_v23, %v1450_v22 }
 0x3d4   : > { %1991 = vst [vmem:[%s2596_s28 + $0x20] sm:$0xff] %v1958_v24  }
 0x3d7   : > { %v1454_v25 = vpop.f32.mrf.mxu1 }
 0x3d8   : > { %v1455_v27 = vadd.f32 %v2589_v63, %v1454_v25 }
 0x3df   : > { %v1456_v26 = vpop.f32.mrf.mxu1 }
 0x3e0   : > { %v1457_v28 = vadd.f32 %v2589_v63, %v1456_v26 }
 0x3e2   : > { %v1963_v29 = vpack.c.bf16 %v1457_v28, %v1455_v27 }
 0x3e4   : > { %1992 = vst [vmem:[%s2596_s28 + $0x28] sm:$0xff] %v1963_v29  }
 0x3e7   : > { %v1459_v30 = vpop.f32.mrf.mxu1 }
 0x3e8   : > { %v1460_v32 = vadd.f32 %v2589_v63, %v1459_v30 }
 0x3ef   : > { %v1461_v31 = vpop.f32.mrf.mxu1 }
 0x3f0   : > { %v1462_v33 = vadd.f32 %v2589_v63, %v1461_v31 }
 0x3f2   : > { %v1968_v34 = vpack.c.bf16 %v1462_v33, %v1460_v32 }
 0x3f4   : > { %1993 = vst [vmem:[%s2596_s28 + $0x30] sm:$0xff] %v1968_v34  }
 0x3f7   : > { %v1464_v35 = vpop.f32.mrf.mxu1 }
 0x3f8   : > { %v1465_v37 = vadd.f32 %v2589_v63, %v1464_v35 }
 0x3ff   : > { %v1466_v36 = vpop.f32.mrf.mxu1 }
 0x400   : > { %v1467_v38 = vadd.f32 %v2589_v63, %v1466_v36 }
 0x402   : > { %v1973_v39 = vpack.c.bf16 %v1467_v38, %v1465_v37 }
 0x404   : > { %1994 = vst [vmem:[%s2596_s28 + $0x38] sm:$0xff] %v1973_v39  }
 0x407   : > { %v1469_v40 = vpop.f32.mrf.mxu1 }
 0x408   : > { %v1470_v43 = vadd.f32 %v2589_v63, %v1469_v40 }
 0x40f   : > { %v1471_v41 = vpop.f32.mrf.mxu1 }
 0x410   : > { %v1472_v45 = vadd.f32 %v2589_v63, %v1471_v41 }
 0x412   : > { %v1978_v46 = vpack.c.bf16 %v1472_v45, %v1470_v43 }
 0x414   : > { %1995 = vst [vmem:[%s2596_s28 + $0x40] sm:$0xff] %v1978_v46  }
 0x417   : > { %v1474_v47 = vpop.f32.mrf.mxu1 }
 0x418   : > { %v1475_v48 = vadd.f32 %v2589_v63, %v1474_v47 }
 0x41a   : > { %v1496_v49 = vpack.c.bf16 %v1475_v48, %v1475_v48 }
 0x41c   : > { %1515 = vst [vmem:[%s2596_s28 + $0x48] sm:$0xf] %v1496_v49 }
 0x41d   : > { %2116 = shalt.err (!%p2113_p12)
}
 0x41e   : > { %2009 = dma.vmem_to_hbm [thread:$0]  (%p2272_p5), %s1535_s4, 1216, %s1537_s18, %s1517_s25, %s2157_s20, %s2157_s20, %s2158_s21  }
 0x41f   : > { %v1476_v50 = vpop.f32.mrf.mxu1 }
 0x420 PF: > { %p2020_p13 = scmp.ge.s32.totalorder %s2155_s16, 2  ;;  %s1568_s26 = sand.u32 1, %s2143_s29  }
 0x421   : > { %s1569_s28 = scalar_lea.sflag [#allocation3], %s1568_s26 }
 0x422   : > { %p2014_p0 = pnand %p2020_p13, %p2276_p6 }
 0x424   : > { %p2015_p1 = pneg %p2014_p0 }
 0x426   : > { %2134 = dma.done.wait (%p2015_p1), %s1569_s28, 1216  }
 0x427   : > { %2136 = vsyncadd (%p2015_p1), %s1569_s28, 4294966080  ;;  %s1579_s3 = scalar_lea.sflag [#allocation5], %s1568_s26 }
 0x428   : > { %2138 = dma.done.wait (%p2015_p1), %s1579_s3, 1216  }
 0x429   : > { %2140 = vsyncadd (%p2015_p1), %s1579_s3, 4294966080  ;;  %s2715_s23 = sld [smem:[#allocation8_spill]]  ;;  %p28_p5 = scmp.ge.s32.totalorder %s2259_s19, 4  }
 0x42a   : > { %s2716_s15 = sld [smem:[#allocation9_spill]]  ;;  %s2717_s29 = smov %s2147_s30 }
 0x42b   : > { %s2719_s16 = smov %s2259_s19  ;;  %30 = sbr.rel (!%p28_p5) target bundleno = 11 (0xb), region = 124 }
 0x42f   : > { %s2718_s30 = smov %s2715_s23 }
 0x430   :  { %1585 = vsyncpa [#allocation3], 1 }
 0x431   :  { %1587 = vsyncpa [#allocation3 + $0x1], 1 }
 0x432   :  { %1588 = vsyncpa [#allocation5], 1 }
 0x433   :  { %1590 = vsyncpa [#allocation5 + $0x1], 1 }

</bundles_post_ra>
